<compile_context>
chip_gen: v5e
topology: v5e:2x2
jax: 0.10.0
libtpu: 0.0.40
codegen_flags: <defaults>
</compile_context>

<pallas_src>
import jax
import jax.numpy as jnp
from jax.experimental import pallas as pl
from jax.experimental.pallas import tpu as pltpu

HID = 128  # padded (lane-dense) hidden width


def fnn_kernel(x_ref, w1_ref, b1_ref, w2_ref, b2_ref, w3_ref, b3_ref,
               w4_ref, b4_ref, o_ref):
    # fc1 + relu (dropout1 == identity in eval mode).  MXU, f32 accumulation.
    # x is cast to the MXU operand dtype here (in-kernel, hidden under the pipeline).
    h = jnp.dot(x_ref[...].astype(w1_ref.dtype), w1_ref[...],
                preferred_element_type=jnp.float32) + b1_ref[...]
    h = jnp.maximum(h, 0.0)
    # fc2 + relu (dropout2 == identity)
    h = jnp.dot(h.astype(w2_ref.dtype), w2_ref[...],
                preferred_element_type=jnp.float32) + b2_ref[...]
    h = jnp.maximum(h, 0.0)
    # fc3 + relu (dropout3 == identity)
    h = jnp.dot(h.astype(w3_ref.dtype), w3_ref[...],
                preferred_element_type=jnp.float32) + b3_ref[...]
    h = jnp.maximum(h, 0.0)
    # fc4 (out_features == 1): VPU multiply + XLU cross-lane reduce instead of an
    # N=1 MXU matmul (padded lanes of w4 are zero, so they contribute nothing).
    out = jnp.sum(h * w4_ref[...], axis=-1, keepdims=True) + b4_ref[...]
    o_ref[...] = out.astype(o_ref.dtype)


def prepare_params(params, compute_dtype=jnp.bfloat16):
    """Pad hidden dims to 128 lanes and cast MXU operands ONCE (hoisted out of the
    per-call path).  bf16 operands are safe on v5e/v6e/v7x; accumulation, bias, ReLU
    and the fc4 reduce remain f32."""
    f32 = jnp.float32
    pad_cols = lambda a, n: jnp.pad(a, ((0, 0), (0, n - a.shape[1])))
    pad_rows = lambda a, n: jnp.pad(a, ((0, n - a.shape[0]), (0, 0)))
    return dict(
        w1=pad_cols(params["w1"], HID).astype(compute_dtype),   # (D, 128)
        b1=pad_cols(params["b1"], HID).astype(f32),              # (1, 128)
        w2=pad_rows(params["w2"], HID).astype(compute_dtype),    # (128, 128)
        b2=params["b2"].astype(f32),                             # (1, 128)
        w3=pad_cols(params["w3"], HID).astype(compute_dtype),    # (128, 128)
        b3=pad_cols(params["b3"], HID).astype(f32),              # (1, 128)
        w4=pad_cols(params["w4"].T, HID).astype(f32),            # (1, 128) row, VPU path
        b4=params["b4"].astype(f32),                             # (1, 1)
    )


def _pick_tile(B, tile_b):
    """Largest multiple of 8 that divides B, <= tile_b, preferring >= 2 grid steps
    (so the parallel batch axis can shard across v7x's 2 TensorCores)."""
    assert B % 8 == 0, "batch must be a multiple of 8 (sublane tiling)"
    cap = min(tile_b, B)
    if B >= 16:
        cap = min(cap, B // 2)          # guarantee >= 2 grid steps when possible
    tb = max(8, (cap // 8) * 8)
    while tb > 8 and B % tb != 0:
        tb -= 8
    return tb if B % tb == 0 else 8


def fnn_forward(x, p, *, tile_b=2048):
    """x: (B, D), any float dtype (cast to the weight dtype inside the kernel).
    p: output of prepare_params().  tile_b: batch tile target (sweep 1024-4096;
    keep <= ~8192 on v7x, whose physical VMEM is 64 MiB)."""
    B, D = x.shape
    tb = _pick_tile(B, tile_b)
    n_steps = B // tb

    # Grid-invariant operands: constant index_map -> fetched once, not re-DMA'd per step.
    full = lambda a: pl.BlockSpec(a.shape, lambda i: (0, 0))

    # Advisory cost estimate so XLA schedules neighbors around the custom call.
    w_bytes = sum(int(v.size) * v.dtype.itemsize for v in p.values())
    cost = pl.CostEstimate(
        flops=2 * B * (D * HID + HID * HID + HID * HID + HID),
        transcendentals=0,
        bytes_accessed=B * D * x.dtype.itemsize + B * 4 + w_bytes,
    )

    return pl.pallas_call(
        fnn_kernel,
        out_shape=jax.ShapeDtypeStruct((B, 1), jnp.float32),
        grid_spec=pltpu.PrefetchScalarGridSpec(
            num_scalar_prefetch=0,
            grid=(n_steps,),
            in_specs=[
                pl.BlockSpec((tb, D), lambda i: (i, 0)),   # x tile (streamed, original dtype)
                full(p["w1"]), full(p["b1"]),
                full(p["w2"]), full(p["b2"]),
                full(p["w3"]), full(p["b3"]),
                full(p["w4"]), full(p["b4"]),
            ],
            out_specs=pl.BlockSpec((tb, 1), lambda i: (i, 0)),
        ),
        compiler_params=pltpu.CompilerParams(
            dimension_semantics=("parallel",)),   # batch axis shards across TCs (v7x)
        cost_estimate=cost,
    )(x, p["w1"], p["b1"], p["w2"], p["b2"], p["w3"], p["b3"], p["w4"], p["b4"])


def init_params(key, input_dim):
    """nn.Linear-style init (uniform +/- 1/sqrt(fan_in)); weights stored (in, out)."""
    dims = [(input_dim, 64), (64, 128), (128, 64), (64, 1)]
    params = {}
    for idx, (fan_in, fan_out) in enumerate(dims, start=1):
        key, kw, kb = jax.random.split(key, 3)
        bound = 1.0 / jnp.sqrt(fan_in)
        params[f"w{idx}"] = jax.random.uniform(
            kw, (fan_in, fan_out), jnp.float32, -bound, bound)
        params[f"b{idx}"] = jax.random.uniform(
            kb, (1, fan_out), jnp.float32, -bound, bound)
    return params


def fnn_reference(x, p):
    h = jnp.maximum(x @ p["w1"] + p["b1"], 0.0)
    h = jnp.maximum(h @ p["w2"] + p["b2"], 0.0)
    h = jnp.maximum(h @ p["w3"] + p["b3"], 0.0)
    return h @ p["w4"] + p["b4"]


if __name__ == "__main__":
    key = jax.random.PRNGKey(0)
    key, kx, kp = jax.random.split(key, 3)

    B, D = 256, 32                      # small shapes: batch=256, input_dim=32
    x = jax.random.normal(kx, (B, D), jnp.float32)
    params = init_params(kp, D)
    ref = fnn_reference(x, params)

    # f32 MXU operands (exact-ish path); weights padded/cast once, outside the call.
    p_f32 = prepare_params(params, compute_dtype=jnp.float32)
    out = jax.block_until_ready(fnn_forward(x, p_f32))
    assert out.shape == (B, 1), out.shape
    assert jnp.allclose(out, ref, atol=2e-5, rtol=2e-5), "f32 mismatch vs reference"

    # Smaller tile: several grid steps, exercises the input/output pipeline.
    out_tiled = jax.block_until_ready(fnn_forward(x, p_f32, tile_b=64))
    assert jnp.allclose(out_tiled, ref, atol=2e-5, rtol=2e-5), "tiled mismatch vs reference"

    # bf16 MXU operands (default; fine on v5e/v6e/v7x), f32 accumulation -- loose tolerance.
    p_bf16 = prepare_params(params)     # compute_dtype=jnp.bfloat16
    out_bf16 = jax.block_until_ready(fnn_forward(x, p_bf16))
    assert out_bf16.shape == (B, 1)
    assert jnp.allclose(out_bf16, ref, atol=5e-2, rtol=5e-2), "bf16 mismatch vs reference"

    print("KERNEL_OK")
</pallas_src>

<mosaic_0001>
module attributes {stable_mosaic.version = 11 : i64} {
  func.func @fnn_kernel(%arg0: i32, %arg1: memref<128x32xf32, #tpu.memory_space<vmem>>, %arg2: memref<32x128xf32, #tpu.memory_space<vmem>>, %arg3: memref<1x128xf32, #tpu.memory_space<vmem>>, %arg4: memref<128x128xf32, #tpu.memory_space<vmem>>, %arg5: memref<1x128xf32, #tpu.memory_space<vmem>>, %arg6: memref<128x128xf32, #tpu.memory_space<vmem>>, %arg7: memref<1x128xf32, #tpu.memory_space<vmem>>, %arg8: memref<1x128xf32, #tpu.memory_space<vmem>>, %arg9: memref<1x1xf32, #tpu.memory_space<vmem>>, %arg10: memref<128x1xf32, #tpu.memory_space<vmem>>) attributes {dimension_semantics = [#tpu.dimension_semantics<parallel>], iteration_bounds = array<i64: 2>, scalar_prefetch = 0 : i64, scratch_operands = 0 : i64, tpu.core_type = #tpu.core_type<tc>, window_params = [{transform_indices = @transform_0, window_bounds = array<i64: 128, 32>}, {pipeline_mode = #tpu.pipeline_mode<synchronous>, transform_indices = @transform_1, window_bounds = array<i64: 32, 128>}, {pipeline_mode = #tpu.pipeline_mode<synchronous>, transform_indices = @transform_2, window_bounds = array<i64: 1, 128>}, {pipeline_mode = #tpu.pipeline_mode<synchronous>, transform_indices = @transform_3, window_bounds = array<i64: 128, 128>}, {pipeline_mode = #tpu.pipeline_mode<synchronous>, transform_indices = @transform_4, window_bounds = array<i64: 1, 128>}, {pipeline_mode = #tpu.pipeline_mode<synchronous>, transform_indices = @transform_5, window_bounds = array<i64: 128, 128>}, {pipeline_mode = #tpu.pipeline_mode<synchronous>, transform_indices = @transform_6, window_bounds = array<i64: 1, 128>}, {pipeline_mode = #tpu.pipeline_mode<synchronous>, transform_indices = @transform_7, window_bounds = array<i64: 1, 128>}, {pipeline_mode = #tpu.pipeline_mode<synchronous>, transform_indices = @transform_8, window_bounds = array<i64: 1, 1>}, {transform_indices = @transform_9, window_bounds = array<i64: 128, 1>}]} {
    %c0 = arith.constant 0 : index
    %c0_0 = arith.constant 0 : index
    %0 = vector.load %arg1[%c0, %c0_0] : memref<128x32xf32, #tpu.memory_space<vmem>>, vector<128x32xf32>
    %c0_1 = arith.constant 0 : index
    %c0_2 = arith.constant 0 : index
    %1 = vector.load %arg2[%c0_1, %c0_2] : memref<32x128xf32, #tpu.memory_space<vmem>>, vector<32x128xf32>
    %cst = arith.constant dense<0.000000e+00> : vector<128x128xf32>
    %2 = tpu.matmul %0, %1, %cst {dimension_numbers = #tpu.dot_dimension_numbers<[1], [0], [0], [1], [0, 0, 1, 1], [], []>} : vector<128x32xf32>, vector<32x128xf32>, vector<128x128xf32> -> vector<128x128xf32>
    %c0_3 = arith.constant 0 : index
    %c0_4 = arith.constant 0 : index
    %3 = vector.load %arg3[%c0_3, %c0_4] : memref<1x128xf32, #tpu.memory_space<vmem>>, vector<1x128xf32>
    %4 = vector.broadcast %3 : vector<1x128xf32> to vector<128x128xf32>
    %5 = arith.addf %2, %4 : vector<128x128xf32>
    %cst_5 = arith.constant 0.000000e+00 : f32
    %6 = vector.broadcast %cst_5 : f32 to vector<128x128xf32>
    %7 = arith.maximumf %5, %6 : vector<128x128xf32>
    %c0_6 = arith.constant 0 : index
    %c0_7 = arith.constant 0 : index
    %8 = vector.load %arg4[%c0_6, %c0_7] : memref<128x128xf32, #tpu.memory_space<vmem>>, vector<128x128xf32>
    %cst_8 = arith.constant dense<0.000000e+00> : vector<128x128xf32>
    %9 = tpu.matmul %7, %8, %cst_8 {dimension_numbers = #tpu.dot_dimension_numbers<[1], [0], [0], [1], [0, 0, 1, 1], [], []>} : vector<128x128xf32>, vector<128x128xf32>, vector<128x128xf32> -> vector<128x128xf32>
    %c0_9 = arith.constant 0 : index
    %c0_10 = arith.constant 0 : index
    %10 = vector.load %arg5[%c0_9, %c0_10] : memref<1x128xf32, #tpu.memory_space<vmem>>, vector<1x128xf32>
    %11 = vector.broadcast %10 : vector<1x128xf32> to vector<128x128xf32>
    %12 = arith.addf %9, %11 : vector<128x128xf32>
    %cst_11 = arith.constant 0.000000e+00 : f32
    %13 = vector.broadcast %cst_11 : f32 to vector<128x128xf32>
    %14 = arith.maximumf %12, %13 : vector<128x128xf32>
    %c0_12 = arith.constant 0 : index
    %c0_13 = arith.constant 0 : index
    %15 = vector.load %arg6[%c0_12, %c0_13] : memref<128x128xf32, #tpu.memory_space<vmem>>, vector<128x128xf32>
    %cst_14 = arith.constant dense<0.000000e+00> : vector<128x128xf32>
    %16 = tpu.matmul %14, %15, %cst_14 {dimension_numbers = #tpu.dot_dimension_numbers<[1], [0], [0], [1], [0, 0, 1, 1], [], []>} : vector<128x128xf32>, vector<128x128xf32>, vector<128x128xf32> -> vector<128x128xf32>
    %c0_15 = arith.constant 0 : index
    %c0_16 = arith.constant 0 : index
    %17 = vector.load %arg7[%c0_15, %c0_16] : memref<1x128xf32, #tpu.memory_space<vmem>>, vector<1x128xf32>
    %18 = vector.broadcast %17 : vector<1x128xf32> to vector<128x128xf32>
    %19 = arith.addf %16, %18 : vector<128x128xf32>
    %cst_17 = arith.constant 0.000000e+00 : f32
    %20 = vector.broadcast %cst_17 : f32 to vector<128x128xf32>
    %21 = arith.maximumf %19, %20 : vector<128x128xf32>
    %c0_18 = arith.constant 0 : index
    %c0_19 = arith.constant 0 : index
    %22 = vector.load %arg8[%c0_18, %c0_19] : memref<1x128xf32, #tpu.memory_space<vmem>>, vector<1x128xf32>
    %23 = vector.broadcast %22 : vector<1x128xf32> to vector<128x128xf32>
    %24 = arith.mulf %21, %23 : vector<128x128xf32>
    %cst_20 = arith.constant dense<0.000000e+00> : vector<128xf32>
    %25 = vector.multi_reduction <add>, %24, %cst_20 [1] : vector<128x128xf32> to vector<128xf32>
    %26 = vector.shape_cast %25 : vector<128xf32> to vector<128x1xf32>
    %c0_21 = arith.constant 0 : index
    %c0_22 = arith.constant 0 : index
    %27 = vector.load %arg9[%c0_21, %c0_22] : memref<1x1xf32, #tpu.memory_space<vmem>>, vector<1x1xf32>
    %28 = vector.broadcast %27 : vector<1x1xf32> to vector<128x1xf32>
    %29 = arith.addf %26, %28 : vector<128x1xf32>
    %c0_23 = arith.constant 0 : index
    %c0_24 = arith.constant 0 : index
    %30 = vector.load %arg10[%c0_23, %c0_24] : memref<128x1xf32, #tpu.memory_space<vmem>>, vector<128x1xf32>
    tpu.vector_store %arg10[%c0_23, %c0_24], %29 {strides = array<i32>} : memref<128x1xf32, #tpu.memory_space<vmem>>, vector<128x1xf32>,
    return
  }
  func.func @transform_0(%arg0: i32) -> (i32, i32) {
    %c0_i32 = arith.constant 0 : i32
    %c0_i32_0 = arith.constant 0 : i32
    return %arg0, %c0_i32 : i32, i32
  }
  func.func @transform_1(%arg0: i32) -> (i32, i32) {
    %c0_i32 = arith.constant 0 : i32
    %c0_i32_0 = arith.constant 0 : i32
    %c0_i32_1 = arith.constant 0 : i32
    return %c0_i32, %c0_i32_0 : i32, i32
  }
  func.func @transform_2(%arg0: i32) -> (i32, i32) {
    %c0_i32 = arith.constant 0 : i32
    %c0_i32_0 = arith.constant 0 : i32
    %c0_i32_1 = arith.constant 0 : i32
    return %c0_i32, %c0_i32_0 : i32, i32
  }
  func.func @transform_3(%arg0: i32) -> (i32, i32) {
    %c0_i32 = arith.constant 0 : i32
    %c0_i32_0 = arith.constant 0 : i32
    %c0_i32_1 = arith.constant 0 : i32
    return %c0_i32, %c0_i32_0 : i32, i32
  }
  func.func @transform_4(%arg0: i32) -> (i32, i32) {
    %c0_i32 = arith.constant 0 : i32
    %c0_i32_0 = arith.constant 0 : i32
    %c0_i32_1 = arith.constant 0 : i32
    return %c0_i32, %c0_i32_0 : i32, i32
  }
  func.func @transform_5(%arg0: i32) -> (i32, i32) {
    %c0_i32 = arith.constant 0 : i32
    %c0_i32_0 = arith.constant 0 : i32
    %c0_i32_1 = arith.constant 0 : i32
    return %c0_i32, %c0_i32_0 : i32, i32
  }
  func.func @transform_6(%arg0: i32) -> (i32, i32) {
    %c0_i32 = arith.constant 0 : i32
    %c0_i32_0 = arith.constant 0 : i32
    %c0_i32_1 = arith.constant 0 : i32
    return %c0_i32, %c0_i32_0 : i32, i32
  }
  func.func @transform_7(%arg0: i32) -> (i32, i32) {
    %c0_i32 = arith.constant 0 : i32
    %c0_i32_0 = arith.constant 0 : i32
    %c0_i32_1 = arith.constant 0 : i32
    return %c0_i32, %c0_i32_0 : i32, i32
  }
  func.func @transform_8(%arg0: i32) -> (i32, i32) {
    %c0_i32 = arith.constant 0 : i32
    %c0_i32_0 = arith.constant 0 : i32
    %c0_i32_1 = arith.constant 0 : i32
    return %c0_i32, %c0_i32_0 : i32, i32
  }
  func.func @transform_9(%arg0: i32) -> (i32, i32) {
    %c0_i32 = arith.constant 0 : i32
    %c0_i32_0 = arith.constant 0 : i32
    return %arg0, %c0_i32 : i32, i32
  }
}

</mosaic_0001>

<bundles_post_ra>
// kernel: tpu_custom_call.1
= control target key start
LH: loop header
LB: loop body
LE: loop exit
PB: predicated region body
PF: predicated region fallthrough
CT: control target
= control target key end

     0   :  { %s972_s11 = smov 0   ;;  %s1238_s0 = inlined_call_operand.vmem [shape: f32[256,32], index: 0, kind: input, shape index: {}]   ;;  %s1239_s1 = inlined_call_operand.vmem [shape: f32[32,128], index: 1, kind: input, shape index: {}]   ;;  %s1240_s2 = inlined_call_operand.vmem [shape: f32[1,128], index: 2, kind: input, shape index: {}]   ;;  %s1241_s3 = inlined_call_operand.vmem [shape: f32[128,128], index: 3, kind: input, shape index: {}]   ;;  %s1242_s4 = inlined_call_operand.vmem [shape: f32[1,128], index: 4, kind: input, shape index: {}]   ;;  %s1243_s5 = inlined_call_operand.vmem [shape: f32[128,128], index: 5, kind: input, shape index: {}]   ;;  %s1244_s6 = inlined_call_operand.vmem [shape: f32[1,128], index: 6, kind: input, shape index: {}]   ;;  %s1245_s7 = inlined_call_operand.vmem [shape: f32[1,128], index: 7, kind: input, shape index: {}]   ;;  %s1246_s8 = inlined_call_operand.<no memory space> [shape: f32[1,1], index: 8, kind: input, shape index: {}]   ;;  %s1247_s9 = inlined_call_operand.vmem [shape: f32[256,1], index: 9, kind: output, shape index: {}]  }
   0x1   :  { %v14_v0 = vstv %s1246_s8 }
   0x2   :  { %15 = vst [vmem:[#allocation2] sm:$0x1] %v14_v0 }
   0x3 LB: > { %s839_s12 = sadd.s32 4294967295, %s917_s11   ;;  %p843_p0 = scmp.ge.s32.totalorder %s917_s11, 1  ;;  %s917_s11 = sphi %s972_s11, %s21_s11  }
   0x4   : > { %p290_p1 = scmp.lt.s32.totalorder %s917_s11, 3 }
   0x6   : > { %p291_p2 = pnand %p843_p0, %p290_p1 }
   0x7   : > { %s844_s16 = sshll.u32 (!%p291_p2), %s839_s12, 4 }
   0x8   : > { %294 = sbr.rel (%p291_p2) target bundleno = 664 (0x298), region = 56  ;;  %p327_p3 = scmp.lt.s32.totalorder (!%p291_p2), %s844_s16, 31 }
   0xd   : > { %v357_v1 = vld [vmem:[%s1239_s1 + $0x18] sm:$0xff]  ;;  %v356_v2 = vld [vmem:[%s1239_s1 + $0x10] sm:$0xff]  ;;  %v355_v3 = vld [vmem:[%s1239_s1 + $0x8] sm:$0xff]  ;;  %s1249_s16 = smov (!%p327_p3, %s844_s16), 31  ;;  %vm362_vm0 = vcmask 261120   ;;  %vm766_vm1 = vcmask 7168  }
   0xe   : > { %423 = vmatpush.msra.mxu0 %v357_v1  ;;  %v354_v4 = vld [vmem:[%s1239_s1] sm:$0xff]  ;;  %s845_s21 = sshll.u32 %s1249_s16, 3  ;;  %v507_v14 = vld [vmem:[%s1241_s3 + $0x78] sm:$0xff]  ;;  %v506_v15 = vld [vmem:[%s1241_s3 + $0x70] sm:$0xff] }
   0xf   : > { %s1000_s24 = scalar_lea.vmem %s1238_s0, %s845_s21  ;;  %512 = vmatpush.msra.mxu1 %v507_v14  ;;  %866 = vmatpush.msra.mxu3 %v507_v14  ;;  %v505_v16 = vld [vmem:[%s1241_s3 + $0x68] sm:$0xff]  ;;  %v504_v18 = vld [vmem:[%s1241_s3 + $0x60] sm:$0xff]  ;;  %v503_v19 = vld [vmem:[%s1241_s3 + $0x58] sm:$0xff]  ;;  %s1198_s23 = scalar_lea.vmem %s1247_s9, %s845_s21 }
  0x10   : > { %424 = vmatpush.msra.mxu0 %v356_v2  ;;  %v338_v5 = vld [vmem:[%s1000_s24] sm:$0xff]  ;;  %v339_v6 = vld [vmem:[%s1000_s24 + $0x8] sm:$0xff]  ;;  %v340_v7 = vld [vmem:[%s1000_s24 + $0x10] sm:$0xff] }
  0x11   : > { %v341_v8 = vld [vmem:[%s1000_s24 + $0x18] sm:$0xff]  ;;  %v342_v9 = vld [vmem:[%s1000_s24 + $0x20] sm:$0xff]  ;;  %v343_v10 = vld [vmem:[%s1000_s24 + $0x28] sm:$0xff]  ;;  %513 = vmatpush.msra.mxu1 %v506_v15  ;;  %867 = vmatpush.msra.mxu3 %v506_v15 }
  0x12   : > { %425 = vmatpush.msra.mxu0 %v355_v3  ;;  %v344_v11 = vld [vmem:[%s1000_s24 + $0x30] sm:$0xff]  ;;  %v345_v12 = vld [vmem:[%s1000_s24 + $0x38] sm:$0xff]  ;;  %v346_v13 = vld [vmem:[%s1000_s24 + $0x40] sm:$0xff] }
  0x13   : > { %v347_v17 = vld [vmem:[%s1000_s24 + $0x48] sm:$0xff]  ;;  %514 = vmatpush.msra.mxu1 %v505_v16  ;;  %868 = vmatpush.msra.mxu3 %v505_v16  ;;  %v502_v20 = vld [vmem:[%s1241_s3 + $0x50] sm:$0xff]  ;;  %v500_v23 = vld [vmem:[%s1241_s3 + $0x40] sm:$0xff] }
  0x14   : > { %426 = vmatpush.msra.mxu0 %v354_v4  ;;  %v501_v21 = vld [vmem:[%s1241_s3 + $0x48] sm:$0xff]  ;;  %v348_v22 = vld [vmem:[%s1000_s24 + $0x50] sm:$0xff]  ;;  %v499_v24 = vld [vmem:[%s1241_s3 + $0x38] sm:$0xff] }
  0x15   : > { %848 = vmatmul.msk.f32.vlgmr.msra.gmra.mxu0 %vm362_vm0, %v338_v5  ;;  %515 = vmatpush.msra.mxu1 %v504_v18  ;;  %v498_v25 = vld [vmem:[%s1241_s3 + $0x30] sm:$0xff]  ;;  %v497_v26 = vld [vmem:[%s1241_s3 + $0x28] sm:$0xff]  ;;  %v349_v27 = vld [vmem:[%s1000_s24 + $0x58] sm:$0xff] }
  0x16   : > { %869 = vmatpush.msra.mxu3 %v504_v18  ;;  %v496_v28 = vld [vmem:[%s1241_s3 + $0x20] sm:$0xff]  ;;  %v495_v29 = vld [vmem:[%s1241_s3 + $0x18] sm:$0xff]  ;;  %v494_v30 = vld [vmem:[%s1241_s3 + $0x10] sm:$0xff] }
  0x17   : > { %516 = vmatpush.msra.mxu1 %v503_v19  ;;  %v350_v31 = vld [vmem:[%s1000_s24 + $0x60] sm:$0xff]  ;;  %v493_v32 = vld [vmem:[%s1241_s3 + $0x8] sm:$0xff]  ;;  %v352_v35 = vld [vmem:[%s1000_s24 + $0x70] sm:$0xff] }
  0x18   : > { %870 = vmatpush.msra.mxu3 %v503_v19  ;;  %v492_v33 = vld [vmem:[%s1241_s3] sm:$0xff]  ;;  %v351_v34 = vld [vmem:[%s1000_s24 + $0x68] sm:$0xff]  ;;  %v353_v36 = vld [vmem:[%s1000_s24 + $0x78] sm:$0xff] }
  0x19   : > { %517 = vmatpush.msra.mxu1 %v502_v20  ;;  %v1085_v37 = vld [vmem:[%s1240_s2] ss:$0 sm:$0xff]  ;;  %v608_v1 = vld [vmem:[%s1243_s5 + $0x78] sm:$0xff]  ;;  %v607_v4 = vld [vmem:[%s1243_s5 + $0x70] sm:$0xff] }
  0x1a   : > { %871 = vmatpush.msra.mxu3 %v502_v20  ;;  %613 = vmatpush.msra.mxu2 %v608_v1  ;;  %v601_v14 = vld [vmem:[%s1243_s5 + $0x40] sm:$0xff]  ;;  %v600_v15 = vld [vmem:[%s1243_s5 + $0x38] sm:$0xff]  ;;  %v599_v18 = vld [vmem:[%s1243_s5 + $0x30] sm:$0xff] }
  0x1b   : > { %518 = vmatpush.msra.mxu1 %v501_v21  ;;  %v598_v20 = vld [vmem:[%s1243_s5 + $0x28] sm:$0xff] }
  0x1c   : > { %872 = vmatpush.msra.mxu3 %v501_v21  ;;  %614 = vmatpush.msra.mxu2 %v607_v4  ;;  %v597_v21 = vld [vmem:[%s1243_s5 + $0x20] sm:$0xff] }
  0x1d   : > { %849 = vmatmul.msk.f32.gmra.mxu0 %vm362_vm0, %v339_v6  ;;  %519 = vmatpush.msra.mxu1 %v500_v23  ;;  %v606_v6 = vld [vmem:[%s1243_s5 + $0x68] sm:$0xff] }
  0x1e   : > { %873 = vmatpush.msra.mxu3 %v500_v23  ;;  %615 = vmatpush.msra.mxu2 %v606_v6 }
  0x1f   : > { %520 = vmatpush.msra.mxu1 %v499_v24 }
  0x20   : > { %874 = vmatpush.msra.mxu3 %v499_v24 }
  0x21   : > { %521 = vmatpush.msra.mxu1 %v498_v25 }
  0x22   : > { %875 = vmatpush.msra.mxu3 %v498_v25  ;;  %v595_v25 = vld [vmem:[%s1243_s5 + $0x10] sm:$0xff] }
  0x23   : > { %522 = vmatpush.msra.mxu1 %v497_v26 }
  0x24   : > { %876 = vmatpush.msra.mxu3 %v497_v26 }
  0x25   : > { %850 = vmatmul.msk.f32.gmra.mxu0 %vm362_vm0, %v340_v7  ;;  %523 = vmatpush.msra.mxu1 %v496_v28  ;;  %v605_v7 = vld [vmem:[%s1243_s5 + $0x60] sm:$0xff] }
  0x26   : > { %877 = vmatpush.msra.mxu3 %v496_v28  ;;  %616 = vmatpush.msra.mxu2 %v605_v7  ;;  %v593_v28 = vld [vmem:[%s1243_s5] sm:$0xff] }
  0x27   : > { %524 = vmatpush.msra.mxu1 %v495_v29 }
  0x28   : > { %878 = vmatpush.msra.mxu3 %v495_v29 }
  0x29   : > { %525 = vmatpush.msra.mxu1 %v494_v30 }
  0x2a   : > { %879 = vmatpush.msra.mxu3 %v494_v30 }
  0x2b   : > { %526 = vmatpush.msra.mxu1 %v493_v32 }
  0x2c   : > { %880 = vmatpush.msra.mxu3 %v493_v32 }
  0x2d   : > { %851 = vmatmul.msk.f32.gmra.mxu0 %vm362_vm0, %v341_v8  ;;  %527 = vmatpush.msra.mxu1 %v492_v33  ;;  %v604_v8 = vld [vmem:[%s1243_s5 + $0x58] sm:$0xff] }
  0x2e   : > { %881 = vmatpush.msra.mxu3 %v492_v33  ;;  %617 = vmatpush.msra.mxu2 %v604_v8 }
  0x30   : > { %882 = vmatpush.msrb.mxu3 %v608_v1 }
  0x32   : > { %883 = vmatpush.msrb.mxu3 %v607_v4 }
  0x34   : > { %884 = vmatpush.msrb.mxu3 %v606_v6 }
  0x35   : > { %852 = vmatmul.msk.f32.gmra.mxu0 %vm362_vm0, %v342_v9 }
  0x36   : > { %885 = vmatpush.msrb.mxu3 %v605_v7 }
  0x38   : > { %886 = vmatpush.msrb.mxu3 %v604_v8 }
  0x3d   : > { %853 = vmatmul.msk.f32.gmra.mxu0 %vm362_vm0, %v343_v10 }
  0x45   : > { %854 = vmatmul.msk.f32.gmra.mxu0 %vm362_vm0, %v344_v11  ;;  %v603_v11 = vld [vmem:[%s1243_s5 + $0x50] sm:$0xff] }
  0x46   : > { %618 = vmatpush.msra.mxu2 %v603_v11  ;;  %887 = vmatpush.msrb.mxu3 %v603_v11 }
  0x4d   : > { %855 = vmatmul.msk.f32.gmra.mxu0 %vm362_vm0, %v345_v12 }
  0x55   : > { %856 = vmatmul.msk.f32.gmra.mxu0 %vm362_vm0, %v346_v13  ;;  %v602_v13 = vld [vmem:[%s1243_s5 + $0x48] sm:$0xff] }
  0x56   : > { %619 = vmatpush.msra.mxu2 %v602_v13  ;;  %888 = vmatpush.msrb.mxu3 %v602_v13 }
  0x58   : > { %620 = vmatpush.msra.mxu2 %v601_v14  ;;  %889 = vmatpush.msrb.mxu3 %v601_v14 }
  0x5a   : > { %621 = vmatpush.msra.mxu2 %v600_v15  ;;  %890 = vmatpush.msrb.mxu3 %v600_v15 }
  0x5c   : > { %622 = vmatpush.msra.mxu2 %v599_v18  ;;  %891 = vmatpush.msrb.mxu3 %v599_v18 }
  0x5d   : > { %857 = vmatmul.msk.f32.gmra.mxu0 %vm362_vm0, %v347_v17 }
  0x5e   : > { %623 = vmatpush.msra.mxu2 %v598_v20  ;;  %892 = vmatpush.msrb.mxu3 %v598_v20 }
  0x60   : > { %624 = vmatpush.msra.mxu2 %v597_v21  ;;  %893 = vmatpush.msrb.mxu3 %v597_v21 }
  0x65   : > { %858 = vmatmul.msk.f32.gmra.mxu0 %vm362_vm0, %v348_v22  ;;  %v596_v22 = vld [vmem:[%s1243_s5 + $0x18] sm:$0xff] }
  0x66   : > { %625 = vmatpush.msra.mxu2 %v596_v22  ;;  %894 = vmatpush.msrb.mxu3 %v596_v22 }
  0x68   : > { %626 = vmatpush.msra.mxu2 %v595_v25  ;;  %895 = vmatpush.msrb.mxu3 %v595_v25 }
  0x6d   : > { %859 = vmatmul.msk.f32.gmra.mxu0 %vm362_vm0, %v349_v27  ;;  %v594_v27 = vld [vmem:[%s1243_s5 + $0x8] sm:$0xff] }
  0x6e   : > { %627 = vmatpush.msra.mxu2 %v594_v27  ;;  %896 = vmatpush.msrb.mxu3 %v594_v27 }
  0x70   : > { %628 = vmatpush.msra.mxu2 %v593_v28  ;;  %897 = vmatpush.msrb.mxu3 %v593_v28 }
  0x75   : > { %860 = vmatmul.msk.f32.gmra.mxu0 %vm362_vm0, %v350_v31 }
  0x7d   : > { %861 = vmatmul.msk.f32.gmra.mxu0 %vm362_vm0, %v351_v34 }
  0x85   : > { %862 = vmatmul.msk.f32.gmra.mxu0 %vm362_vm0, %v352_v35 }
  0x8d   : > { %863 = vmatmul.msk.f32.gmra.mxu0 %vm362_vm0, %v353_v36 }
  0x92   : > { %v428_v38 = vpop.f32.mrf.mxu0 }
  0x93   : > { %v429_v39 = vadd.f32 %v1085_v37, %v428_v38 }
  0x95   : > { %v476_v40 = vmax.f32 %v429_v39, 0.0  ;;  %v907_v39 = vld [vmem:[%s1242_s4] ss:$0 sm:$0xff] }
  0x97   : > { %528 = vmatmul.f32.vlgmr.msra.gmra.mxu1 %v476_v40 }
  0x9a   : > { %v431_v41 = vpop.f32.mrf.mxu0 }
  0x9b   : > { %v432_v42 = vadd.f32 %v1085_v37, %v431_v41 }
  0x9d   : > { %v477_v43 = vmax.f32 %v432_v42, 0.0 }
  0x9f   : > { %531 = vmatmul.f32.gmra.mxu1 %v477_v43 }
  0xa2   : > { %v434_v44 = vpop.f32.mrf.mxu0 }
  0xa3   : > { %v435_v45 = vadd.f32 %v1085_v37, %v434_v44 }
  0xa5   : > { %v478_v46 = vmax.f32 %v435_v45, 0.0 }
  0xa7   : > { %534 = vmatmul.f32.gmra.mxu1 %v478_v46 }
  0xaa   : > { %v437_v47 = vpop.f32.mrf.mxu0 }
  0xab   : > { %v438_v48 = vadd.f32 %v1085_v37, %v437_v47 }
  0xad   : > { %v479_v49 = vmax.f32 %v438_v48, 0.0 }
  0xaf   : > { %537 = vmatmul.f32.gmra.mxu1 %v479_v49 }
  0xb2   : > { %v440_v50 = vpop.f32.mrf.mxu0 }
  0xb3   : > { %v441_v51 = vadd.f32 %v1085_v37, %v440_v50 }
  0xb5   : > { %v480_v52 = vmax.f32 %v441_v51, 0.0 }
  0xb7   : > { %540 = vmatmul.f32.gmra.mxu1 %v480_v52 }
  0xba   : > { %v443_v53 = vpop.f32.mrf.mxu0 }
  0xbb   : > { %v444_v54 = vadd.f32 %v1085_v37, %v443_v53 }
  0xbd   : > { %v481_v55 = vmax.f32 %v444_v54, 0.0 }
  0xbf   : > { %543 = vmatmul.f32.gmra.mxu1 %v481_v55 }
  0xc2   : > { %v446_v56 = vpop.f32.mrf.mxu0 }
  0xc3   : > { %v447_v57 = vadd.f32 %v1085_v37, %v446_v56 }
  0xc5   : > { %v482_v58 = vmax.f32 %v447_v57, 0.0 }
  0xc7   : > { %546 = vmatmul.f32.gmra.mxu1 %v482_v58 }
  0xca   : > { %v449_v59 = vpop.f32.mrf.mxu0 }
  0xcb   : > { %v450_v60 = vadd.f32 %v1085_v37, %v449_v59 }
  0xcd   : > { %v483_v61 = vmax.f32 %v450_v60, 0.0 }
  0xcf   : > { %549 = vmatmul.f32.gmra.mxu1 %v483_v61 }
  0xd2   : > { %v452_v62 = vpop.f32.mrf.mxu0 }
  0xd3   : > { %v453_v63 = vadd.f32 %v1085_v37, %v452_v62 }
  0xd5   : > { %v484_v0 = vmax.f32 %v453_v63, 0.0 }
  0xd7   : > { %552 = vmatmul.f32.gmra.mxu1 %v484_v0 }
  0xda   : > { %v455_v2 = vpop.f32.mrf.mxu0 }
  0xdb   : > { %v456_v3 = vadd.f32 %v1085_v37, %v455_v2 }
  0xdd   : > { %v485_v5 = vmax.f32 %v456_v3, 0.0 }
  0xdf   : > { %555 = vmatmul.f32.gmra.mxu1 %v485_v5 }
  0xe2   : > { %v458_v9 = vpop.f32.mrf.mxu0 }
  0xe3   : > { %v459_v10 = vadd.f32 %v1085_v37, %v458_v9 }
  0xe5   : > { %v486_v12 = vmax.f32 %v459_v10, 0.0 }
  0xe7   : > { %558 = vmatmul.f32.gmra.mxu1 %v486_v12 }
  0xea   : > { %v461_v16 = vpop.f32.mrf.mxu0 }
  0xeb   : > { %v462_v17 = vadd.f32 %v1085_v37, %v461_v16 }
  0xed   : > { %v487_v19 = vmax.f32 %v462_v17, 0.0 }
  0xef   : > { %561 = vmatmul.f32.gmra.mxu1 %v487_v19 }
  0xf2   : > { %v464_v23 = vpop.f32.mrf.mxu0 }
  0xf3   : > { %v465_v24 = vadd.f32 %v1085_v37, %v464_v23  ;;  %v1157_v23 = vld [vmem:[%s1244_s6] ss:$0 sm:$0xff] }
  0xf5   : > { %v488_v26 = vmax.f32 %v465_v24, 0.0 }
  0xf7   : > { %564 = vmatmul.f32.vlgmr.msra.gmra.mxu3 %v488_v26  ;;  %v1163_v26 = vld [vmem:[%s1245_s7] ss:$0 sm:$0xff] }
  0xfa   : > { %v467_v29 = vpop.f32.mrf.mxu0 }
  0xfb   : > { %v468_v30 = vadd.f32 %v1085_v37, %v467_v29 }
  0xfd   : > { %v489_v31 = vmax.f32 %v468_v30, 0.0 }
  0xff   : > { %567 = vmatmul.f32.gmra.mxu3 %v489_v31 }
 0x102   : > { %v470_v32 = vpop.f32.mrf.mxu0 }
 0x103   : > { %v471_v33 = vadd.f32 %v1085_v37, %v470_v32 }
 0x105   : > { %v490_v34 = vmax.f32 %v471_v33, 0.0 }
 0x107   : > { %570 = vmatmul.f32.gmra.mxu3 %v490_v34 }
 0x10a   : > { %v473_v35 = vpop.f32.mrf.mxu0 }
 0x10b   : > { %v474_v36 = vadd.f32 %v1085_v37, %v473_v35 }
 0x10d   : > { %v491_v38 = vmax.f32 %v474_v36, 0.0 }
 0x10f   : > { %573 = vmatmul.f32.gmra.mxu3 %v491_v38 }
 0x114   : > { %v529_v40 = vpop.f32.mrf.mxu1 }
 0x115   : > { %v530_v41 = vadd.f32 %v907_v39, %v529_v40 }
 0x117   : > { %v577_v42 = vmax.f32 %v530_v41, 0.0 }
 0x119   : > { %629 = vmatmul.f32.vlgmr.msra.gmra.mxu2 %v577_v42 }
 0x11c   : > { %v532_v43 = vpop.f32.mrf.mxu1 }
 0x11d   : > { %v533_v44 = vadd.f32 %v907_v39, %v532_v43 }
 0x11f   : > { %v578_v45 = vmax.f32 %v533_v44, 0.0 }
 0x121   : > { %632 = vmatmul.f32.gmra.mxu2 %v578_v45 }
 0x124   : > { %v535_v46 = vpop.f32.mrf.mxu1 }
 0x125   : > { %v536_v47 = vadd.f32 %v907_v39, %v535_v46 }
 0x127   : > { %v579_v48 = vmax.f32 %v536_v47, 0.0 }
 0x129   : > { %635 = vmatmul.f32.gmra.mxu2 %v579_v48 }
 0x12c   : > { %v538_v49 = vpop.f32.mrf.mxu1 }
 0x12d   : > { %v539_v37 = vadd.f32 %v907_v39, %v538_v49 }
 0x12f   : > { %v580_v50 = vmax.f32 %v539_v37, 0.0 }
 0x131   : > { %638 = vmatmul.f32.gmra.mxu2 %v580_v50 }
 0x134   : > { %v541_v51 = vpop.f32.mrf.mxu1 }
 0x135   : > { %v542_v52 = vadd.f32 %v907_v39, %v541_v51 }
 0x137   : > { %v581_v53 = vmax.f32 %v542_v52, 0.0 }
 0x139   : > { %641 = vmatmul.f32.gmra.mxu2 %v581_v53 }
 0x13c   : > { %v544_v54 = vpop.f32.mrf.mxu1 }
 0x13d   : > { %v545_v55 = vadd.f32 %v907_v39, %v544_v54 }
 0x13f   : > { %v582_v56 = vmax.f32 %v545_v55, 0.0 }
 0x141   : > { %644 = vmatmul.f32.gmra.mxu2 %v582_v56 }
 0x144   : > { %v547_v57 = vpop.f32.mrf.mxu1 }
 0x145   : > { %v548_v58 = vadd.f32 %v907_v39, %v547_v57 }
 0x147   : > { %v583_v59 = vmax.f32 %v548_v58, 0.0 }
 0x149   : > { %647 = vmatmul.f32.gmra.mxu2 %v583_v59 }
 0x14c   : > { %v550_v60 = vpop.f32.mrf.mxu1 }
 0x14d   : > { %v551_v61 = vadd.f32 %v907_v39, %v550_v60 }
 0x14f   : > { %v584_v62 = vmax.f32 %v551_v61, 0.0 }
 0x151   : > { %650 = vmatmul.f32.gmra.mxu2 %v584_v62 }
 0x154   : > { %v553_v63 = vpop.f32.mrf.mxu1 }
 0x155   : > { %v554_v0 = vadd.f32 %v907_v39, %v553_v63 }
 0x157   : > { %v585_v1 = vmax.f32 %v554_v0, 0.0 }
 0x159   : > { %653 = vmatmul.f32.gmra.mxu2 %v585_v1 }
 0x15c   : > { %v556_v2 = vpop.f32.mrf.mxu1 }
 0x15d   : > { %v557_v3 = vadd.f32 %v907_v39, %v556_v2 }
 0x15f   : > { %v586_v4 = vmax.f32 %v557_v3, 0.0 }
 0x161   : > { %656 = vmatmul.f32.gmra.mxu2 %v586_v4 }
 0x164   : > { %v559_v5 = vpop.f32.mrf.mxu1 }
 0x165   : > { %v560_v6 = vadd.f32 %v907_v39, %v559_v5 }
 0x167   : > { %v587_v7 = vmax.f32 %v560_v6, 0.0 }
 0x169   : > { %659 = vmatmul.f32.gmra.mxu2 %v587_v7 }
 0x16c   : > { %v562_v8 = vpop.f32.mrf.mxu1 }
 0x16d   : > { %v563_v9 = vadd.f32 %v907_v39, %v562_v8 }
 0x16f   : > { %v588_v10 = vmax.f32 %v563_v9, 0.0 }
 0x171   : > { %662 = vmatmul.f32.gmra.mxu2 %v588_v10 }
 0x17a   : > { %v565_v11 = vpop.f32.mrf.mxu3 }
 0x17b   : > { %v566_v12 = vadd.f32 %v907_v39, %v565_v11 }
 0x17d   : > { %v589_v13 = vmax.f32 %v566_v12, 0.0 }
 0x17f   : > { %665 = vmatmul.f32.vlgmr.msrb.gmra.mxu3 %v589_v13 }
 0x182   : > { %v568_v14 = vpop.f32.mrf.mxu3 }
 0x183   : > { %v569_v15 = vadd.f32 %v907_v39, %v568_v14 }
 0x185   : > { %v590_v16 = vmax.f32 %v569_v15, 0.0 }
 0x187   : > { %668 = vmatmul.f32.gmra.mxu3 %v590_v16 }
 0x18a   : > { %v571_v17 = vpop.f32.mrf.mxu3 }
 0x18b   : > { %v572_v18 = vadd.f32 %v907_v39, %v571_v17 }
 0x18d   : > { %v591_v19 = vmax.f32 %v572_v18, 0.0 }
 0x18f   : > { %671 = vmatmul.f32.gmra.mxu3 %v591_v19  ;;  %v910_v19 = vld [vmem:[#allocation2] ss:$0 sm:$0xff] }
 0x192   : > { %v574_v20 = vpop.f32.mrf.mxu3 }
 0x193   : > { %v575_v21 = vadd.f32 %v907_v39, %v574_v20 }
 0x195   : > { %v592_v22 = vmax.f32 %v575_v21, 0.0 }
 0x197   : > { %674 = vmatmul.f32.gmra.mxu3 %v592_v22 }
 0x19c   : > { %v630_v24 = vpop.f32.mrf.mxu2 }
 0x19d   : > { %v631_v25 = vadd.f32 %v1157_v23, %v630_v24 }
 0x19f   : > { %v678_v27 = vmax.f32 %v631_v25, 0.0 }
 0x1a1   : > { %v698_v28 = vmul.f32 %v1163_v26, %v678_v27 }
 0x1a3   : > { %714 = vadd.xlane.f32.xlu0 %v698_v28 }
 0x1a4   : > { %v633_v29 = vpop.f32.mrf.mxu2 }
 0x1a5   : > { %v634_v30 = vadd.f32 %v1157_v23, %v633_v29 }
 0x1a7   : > { %v679_v31 = vmax.f32 %v634_v30, 0.0 }
 0x1a9   : > { %v699_v32 = vmul.f32 %v1163_v26, %v679_v31 }
 0x1ab   : > { %716 = vadd.xlane.f32.xlu0 %v699_v32 }
 0x1ac   : > { %v636_v33 = vpop.f32.mrf.mxu2 }
 0x1ad   : > { %v637_v34 = vadd.f32 %v1157_v23, %v636_v33 }
 0x1af   : > { %v680_v35 = vmax.f32 %v637_v34, 0.0 }
 0x1b1   : > { %v700_v36 = vmul.f32 %v1163_v26, %v680_v35 }
 0x1b3   : > { %718 = vadd.xlane.f32.xlu1 %v700_v36 }
 0x1b4   : > { %v639_v38 = vpop.f32.mrf.mxu2 }
 0x1b5   : > { %v640_v39 = vadd.f32 %v1157_v23, %v639_v38 }
 0x1b7   : > { %v681_v40 = vmax.f32 %v640_v39, 0.0 }
 0x1b9   : > { %v701_v41 = vmul.f32 %v1163_v26, %v681_v40 }
 0x1bb   : > { %720 = vadd.xlane.f32.xlu1 %v701_v41 }
 0x1bc   : > { %v642_v42 = vpop.f32.mrf.mxu2 }
 0x1bd   : > { %v643_v43 = vadd.f32 %v1157_v23, %v642_v42 }
 0x1bf   : > { %v682_v44 = vmax.f32 %v643_v43, 0.0 }
 0x1c1   : > { %v702_v45 = vmul.f32 %v1163_v26, %v682_v44 }
 0x1c3   : > { %722 = vadd.xlane.f32.xlu2 %v702_v45 }
 0x1c4   : > { %v645_v46 = vpop.f32.mrf.mxu2 }
 0x1c5   : > { %v646_v47 = vadd.f32 %v1157_v23, %v645_v46 }
 0x1c7   : > { %v683_v48 = vmax.f32 %v646_v47, 0.0 }
 0x1c9   : > { %v703_v49 = vmul.f32 %v1163_v26, %v683_v48 }
 0x1cb   : > { %724 = vadd.xlane.f32.xlu2 %v703_v49 }
 0x1cc   : > { %v648_v37 = vpop.f32.mrf.mxu2 }
 0x1cd   : > { %v649_v50 = vadd.f32 %v1157_v23, %v648_v37 }
 0x1cf   : > { %v684_v51 = vmax.f32 %v649_v50, 0.0 }
 0x1d1   : > { %v704_v52 = vmul.f32 %v1163_v26, %v684_v51 }
 0x1d3   : > { %726 = vadd.xlane.f32.xlu0 %v704_v52 }
 0x1d4   : > { %v651_v53 = vpop.f32.mrf.mxu2 }
 0x1d5   : > { %v652_v54 = vadd.f32 %v1157_v23, %v651_v53 }
 0x1d7   : > { %v685_v55 = vmax.f32 %v652_v54, 0.0 }
 0x1d9   : > { %v705_v56 = vmul.f32 %v1163_v26, %v685_v55 }
 0x1db   : > { %728 = vadd.xlane.f32.xlu1 %v705_v56 }
 0x1dc   : > { %v654_v57 = vpop.f32.mrf.mxu2 }
 0x1dd   : > { %v655_v58 = vadd.f32 %v1157_v23, %v654_v57 }
 0x1df   : > { %v686_v59 = vmax.f32 %v655_v58, 0.0 }
 0x1e1   : > { %v706_v60 = vmul.f32 %v1163_v26, %v686_v59 }
 0x1e3   : > { %730 = vadd.xlane.f32.xlu2 %v706_v60 }
 0x1e4   : > { %v657_v61 = vpop.f32.mrf.mxu2 }
 0x1e5   : > { %v658_v62 = vadd.f32 %v1157_v23, %v657_v61 }
 0x1e7   : > { %v687_v63 = vmax.f32 %v658_v62, 0.0 }
 0x1e9   : > { %v707_v0 = vmul.f32 %v1163_v26, %v687_v63 }
 0x1eb   : > { %732 = vadd.xlane.f32.xlu0 %v707_v0 }
 0x1ec   : > { %v660_v1 = vpop.f32.mrf.mxu2 }
 0x1ed   : > { %v661_v2 = vadd.f32 %v1157_v23, %v660_v1 }
 0x1ef   : > { %v688_v3 = vmax.f32 %v661_v2, 0.0 }
 0x1f1   : > { %v708_v4 = vmul.f32 %v1163_v26, %v688_v3 }
 0x1f3   : > { %734 = vadd.xlane.f32.xlu1 %v708_v4 }
 0x1f4   : > { %v663_v5 = vpop.f32.mrf.mxu2 }
 0x1f5   : > { %v664_v6 = vadd.f32 %v1157_v23, %v663_v5 }
 0x1f7   : > { %v689_v7 = vmax.f32 %v664_v6, 0.0 }
 0x1f9   : > { %v709_v8 = vmul.f32 %v1163_v26, %v689_v7 }
 0x1fb   : > { %736 = vadd.xlane.f32.xlu2 %v709_v8 }
 0x202   : > { %v666_v9 = vpop.f32.mrf.mxu3 }
 0x203   : > { %v667_v10 = vadd.f32 %v1157_v23, %v666_v9 }
 0x205   : > { %v690_v11 = vmax.f32 %v667_v10, 0.0 }
 0x207   : > { %v710_v12 = vmul.f32 %v1163_v26, %v690_v11 }
 0x209   : > { %738 = vadd.xlane.f32.xlu0 %v710_v12 }
 0x20a   : > { %v669_v13 = vpop.f32.mrf.mxu3 }
 0x20b   : > { %v670_v14 = vadd.f32 %v1157_v23, %v669_v13 }
 0x20d   : > { %v691_v15 = vmax.f32 %v670_v14, 0.0 }
 0x20f   : > { %v711_v16 = vmul.f32 %v1163_v26, %v691_v15 }
 0x211   : > { %740 = vadd.xlane.f32.xlu1 %v711_v16 }
 0x212   : > { %v672_v17 = vpop.f32.mrf.mxu3 }
 0x213   : > { %v673_v18 = vadd.f32 %v1157_v23, %v672_v17 }
 0x215   : > { %v692_v20 = vmax.f32 %v673_v18, 0.0 }
 0x216   : > { %v715_v21 = vpop.xlane.xlu0 %714 }
 0x217   : > { %v750_v22 = vadd.f32 %v910_v19, %v715_v21  ;;  %v712_v24 = vmul.f32 %v1163_v26, %v692_v20 }
 0x219   : > { %767 = vst.msk [vmem:[%s1198_s23] sm:$0xff] %vm766_vm1, %v750_v22  ;;  %742 = vadd.xlane.f32.xlu2 %v712_v24 }
 0x21a   : > { %v675_v25 = vpop.f32.mrf.mxu3 }
 0x21b   : > { %v676_v27 = vadd.f32 %v1157_v23, %v675_v25 }
 0x21d   : > { %v693_v28 = vmax.f32 %v676_v27, 0.0 }
 0x21e   : > { %v717_v29 = vpop.xlane.xlu0 %716 }
 0x21f   : > { %v751_v30 = vadd.f32 %v910_v19, %v717_v29  ;;  %v713_v31 = vmul.f32 %v1163_v26, %v693_v28 }
 0x221   : > { %768 = vst.msk [vmem:[%s1198_s23 + $0x8] sm:$0xff] %vm766_vm1, %v751_v30  ;;  %744 = vadd.xlane.f32.xlu0 %v713_v31 }
 0x226   : > { %v719_v32 = vpop.xlane.xlu1 %718 }
 0x227   : > { %v752_v33 = vadd.f32 %v910_v19, %v719_v32 }
 0x229   : > { %769 = vst.msk [vmem:[%s1198_s23 + $0x10] sm:$0xff] %vm766_vm1, %v752_v33 }
 0x22e   : > { %v721_v34 = vpop.xlane.xlu1 %720 }
 0x22f   : > { %v753_v35 = vadd.f32 %v910_v19, %v721_v34 }
 0x231   : > { %770 = vst.msk [vmem:[%s1198_s23 + $0x18] sm:$0xff] %vm766_vm1, %v753_v35 }
 0x236   : > { %v723_v23 = vpop.xlane.xlu2 %722 }
 0x237   : > { %v754_v36 = vadd.f32 %v910_v19, %v723_v23 }
 0x239   : > { %771 = vst.msk [vmem:[%s1198_s23 + $0x20] sm:$0xff] %vm766_vm1, %v754_v36 }
 0x23e   : > { %v725_v26 = vpop.xlane.xlu2 %724 }
 0x23f   : > { %v755_v38 = vadd.f32 %v910_v19, %v725_v26 }
 0x241   : > { %772 = vst.msk [vmem:[%s1198_s23 + $0x28] sm:$0xff] %vm766_vm1, %v755_v38 }
 0x246   : > { %v727_v39 = vpop.xlane.xlu0 %726 }
 0x247   : > { %v756_v40 = vadd.f32 %v910_v19, %v727_v39 }
 0x249   : > { %773 = vst.msk [vmem:[%s1198_s23 + $0x30] sm:$0xff] %vm766_vm1, %v756_v40 }
 0x24e   : > { %v729_v41 = vpop.xlane.xlu1 %728 }
 0x24f   : > { %v757_v42 = vadd.f32 %v910_v19, %v729_v41 }
 0x251   : > { %774 = vst.msk [vmem:[%s1198_s23 + $0x38] sm:$0xff] %vm766_vm1, %v757_v42 }
 0x256   : > { %v731_v43 = vpop.xlane.xlu2 %730 }
 0x257   : > { %v758_v44 = vadd.f32 %v910_v19, %v731_v43 }
 0x259   : > { %775 = vst.msk [vmem:[%s1198_s23 + $0x40] sm:$0xff] %vm766_vm1, %v758_v44 }
 0x25e   : > { %v733_v45 = vpop.xlane.xlu0 %732 }
 0x25f   : > { %v759_v46 = vadd.f32 %v910_v19, %v733_v45 }
 0x261   : > { %776 = vst.msk [vmem:[%s1198_s23 + $0x48] sm:$0xff] %vm766_vm1, %v759_v46 }
 0x266   : > { %v735_v47 = vpop.xlane.xlu1 %734 }
 0x267   : > { %v760_v48 = vadd.f32 %v910_v19, %v735_v47 }
 0x269   : > { %777 = vst.msk [vmem:[%s1198_s23 + $0x50] sm:$0xff] %vm766_vm1, %v760_v48 }
 0x26e   : > { %v737_v49 = vpop.xlane.xlu2 %736 }
 0x26f   : > { %v761_v37 = vadd.f32 %v910_v19, %v737_v49 }
 0x271   : > { %778 = vst.msk [vmem:[%s1198_s23 + $0x58] sm:$0xff] %vm766_vm1, %v761_v37 }
 0x27c   : > { %v739_v50 = vpop.xlane.xlu0 %738 }
 0x27d   : > { %v762_v51 = vadd.f32 %v910_v19, %v739_v50 }
 0x27f   : > { %779 = vst.msk [vmem:[%s1198_s23 + $0x60] sm:$0xff] %vm766_vm1, %v762_v51 }
 0x284   : > { %v741_v52 = vpop.xlane.xlu1 %740 }
 0x285   : > { %v763_v53 = vadd.f32 %v910_v19, %v741_v52 }
 0x287   : > { %780 = vst.msk [vmem:[%s1198_s23 + $0x68] sm:$0xff] %vm766_vm1, %v763_v53 }
 0x28c   : > { %v743_v54 = vpop.xlane.xlu2 %742 }
 0x28d   : > { %v764_v55 = vadd.f32 %v910_v19, %v743_v54 }
 0x28f   : > { %781 = vst.msk [vmem:[%s1198_s23 + $0x70] sm:$0xff] %vm766_vm1, %v764_v55 }
 0x294   : > { %v745_v56 = vpop.xlane.xlu0 %744 }
 0x295   : > { %v765_v57 = vadd.f32 %v910_v19, %v745_v56 }
 0x297   : > { %782 = vst.msk [vmem:[%s1198_s23 + $0x78] sm:$0xff] %vm766_vm1, %v765_v57 }
 0x298 PF: > { %s21_s11 = sadd.s32 1, %s917_s11  }
 0x299   : > { %p18_p4 = scmp.ge.s32.totalorder %s21_s11, 4  }
 0x29b   :  { %20 = sbr.rel (!%p18_p4) target bundleno = 3 (0x3), region = 86 }

</bundles_post_ra>
